<compile_context>
chip_gen: v5e
topology: v5e:2x2
jax: 0.10.0
libtpu: 0.0.40
codegen_flags: <defaults>
</compile_context>

<pallas_src>
import functools
from types import SimpleNamespace

import jax
import jax.numpy as jnp
from jax.experimental import pallas as pl
from jax.experimental.pallas import tpu as pltpu


# ----------------------------------------------------------------------------
# Shared per-sample backbone compute (channel-major, all values stay in vregs/VMEM)
# ----------------------------------------------------------------------------

def _backbone_sample(x, w1, b1, w2, b2, fcw, fcb, pool):
    """x: (Cin, HW).  conv1x1+ReLU -> 2x2 avg-pool -> conv1x1+ReLU -> GAP -> fc.
    Returns h1 (C1, HW), h2 (C2, HpWp), logit (nc, 1)."""
    h1 = jnp.maximum(jnp.dot(w1, x, preferred_element_type=jnp.float32) + b1, 0.0)
    pooled = jnp.dot(h1, pool, preferred_element_type=jnp.float32)          # (C1, HpWp)
    h2 = jnp.maximum(jnp.dot(w2, pooled, preferred_element_type=jnp.float32) + b2, 0.0)
    gap = jnp.mean(h2, axis=1, keepdims=True)                               # (C2, 1)
    logit = jnp.dot(fcw, gap, preferred_element_type=jnp.float32) + fcb     # (nc, 1)
    return h1, h2, logit


def _smooth_l1_sum(pred, tgt):
    """Sum of elementwise smooth-L1 (beta=1.0, PyTorch default), kept 2D (1,1)."""
    d = pred - tgt
    ad = jnp.abs(d)
    return jnp.sum(jnp.where(ad < 1.0, 0.5 * d * d, ad - 0.5), keepdims=True)


def _softmax_ce_col(s_col, t_col):
    """-(softmax(teacher) * log_softmax(student)).sum() for one sample; class axis = sublanes."""
    s = s_col - jnp.max(s_col, axis=0, keepdims=True)
    log_p = s - jnp.log(jnp.sum(jnp.exp(s), axis=0, keepdims=True))
    t = jnp.exp(t_col - jnp.max(t_col, axis=0, keepdims=True))
    tgt = t / jnp.sum(t, axis=0, keepdims=True)
    return -jnp.sum(tgt * log_p, keepdims=True)                             # (1, 1)


@functools.lru_cache(maxsize=None)
def _make_pool_matrix(h, w):
    """(H*W, Hp*Wp) matrix implementing 2x2 average pooling (right-multiply h1 @ P)."""
    hp, wp = h // 2, w // 2
    j = jnp.arange(hp * wp)
    yp, xp = j // wp, j % wp
    base = (2 * yp) * w + 2 * xp
    rows = jnp.stack([base, base + 1, base + w, base + w + 1], axis=1)      # (HpWp, 4)
    pool = jnp.zeros((h * w, hp * wp), jnp.float32)
    pool = pool.at[rows, j[:, None]].set(0.25)
    return pool


# ----------------------------------------------------------------------------
# Standalone backbone kernel (init-time probe / eval-mode forward)
# ----------------------------------------------------------------------------

def _backbone_kernel(x_ref, w1_ref, b1_ref, w2_ref, b2_ref, fcw_ref, fcb_ref, pool_ref,
                     f1_ref, f2_ref, logit_ref, *, bn):
    w1, b1 = w1_ref[...], b1_ref[...]
    w2, b2 = w2_ref[...], b2_ref[...]
    fcw, fcb = fcw_ref[...], fcb_ref[...]
    pool = pool_ref[...]
    for i in range(bn):                 # static unroll over samples in the block
        h1, h2, logit = _backbone_sample(x_ref[i], w1, b1, w2, b2, fcw, fcb, pool)
        f1_ref[i] = h1
        f2_ref[i] = h2
        logit_ref[i] = logit


def backbone_forward(x_nchw, params):
    """x_nchw: (N, Cin, H, W).  Returns ([f1, f2] as (N, C, H, W), logits (N, nc))."""
    w1, b1, w2, b2, fcw, fcb = params
    n, cin, h, w = x_nchw.shape
    hw, hpwp = h * w, (h // 2) * (w // 2)
    c1, c2, nc = w1.shape[0], w2.shape[0], fcw.shape[0]
    x = x_nchw.reshape(n, cin, hw).astype(jnp.float32)      # pure reshape -- no transpose/pad
    pool = _make_pool_matrix(h, w)
    bn = n if n <= 8 else 8
    assert n % bn == 0

    f1, f2, logit = pl.pallas_call(
        functools.partial(_backbone_kernel, bn=bn),
        out_shape=(jax.ShapeDtypeStruct((n, c1, hw), jnp.float32),
                   jax.ShapeDtypeStruct((n, c2, hpwp), jnp.float32),
                   jax.ShapeDtypeStruct((n, nc, 1), jnp.float32)),
        grid_spec=pltpu.PrefetchScalarGridSpec(
            num_scalar_prefetch=0,
            grid=(n // bn,),
            in_specs=[
                pl.BlockSpec((bn, cin, hw), lambda i: (i, 0, 0)),
                pl.BlockSpec((c1, cin), lambda i: (0, 0)),
                pl.BlockSpec((c1, 1), lambda i: (0, 0)),
                pl.BlockSpec((c2, c1), lambda i: (0, 0)),
                pl.BlockSpec((c2, 1), lambda i: (0, 0)),
                pl.BlockSpec((nc, c2), lambda i: (0, 0)),
                pl.BlockSpec((nc, 1), lambda i: (0, 0)),
                pl.BlockSpec((hw, hpwp), lambda i: (0, 0)),
            ],
            out_specs=(pl.BlockSpec((bn, c1, hw), lambda i: (i, 0, 0)),
                       pl.BlockSpec((bn, c2, hpwp), lambda i: (i, 0, 0)),
                       pl.BlockSpec((bn, nc, 1), lambda i: (i, 0, 0))),
        ),
        compiler_params=pltpu.CompilerParams(dimension_semantics=("parallel",)),
    )(x, w1, b1, w2, b2, fcw, fcb, pool)

    feats = [f1.reshape(n, c1, h, w), f2.reshape(n, c2, h // 2, w // 2)]   # free reshapes
    return feats, logit.reshape(n, nc)


# ----------------------------------------------------------------------------
# Fully fused distill kernel:
#   teacher backbone + student backbone + proj/smooth-L1 (2 stages) + logit CE
# ----------------------------------------------------------------------------

def _fused_distill_kernel(x_ref,
                          w1t_ref, b1t_ref, w2t_ref, b2t_ref, fct_ref, fcbt_ref,
                          w1s_ref, b1s_ref, w2s_ref, b2s_ref, fcs_ref, fcbs_ref,
                          pool_ref, wp1_ref, sp1_ref, wp2_ref, sp2_ref,
                          slog_ref, tlog_ref, floss_ref, lloss_ref,
                          *, bn, relu, clip, inv_f1, inv_f2, inv_n):
    step = pl.program_id(0)

    @pl.when(step == 0)
    def _():
        # Loss outputs are resident (constant index_map) -> use them as accumulators.
        floss_ref[...] = jnp.zeros_like(floss_ref)
        lloss_ref[...] = jnp.zeros_like(lloss_ref)

    # Hoist all weight loads out of the per-sample loop.
    w1t, b1t, w2t, b2t = w1t_ref[...], b1t_ref[...], w2t_ref[...], b2t_ref[...]
    fct, fcbt = fct_ref[...], fcbt_ref[...]
    w1s, b1s, w2s, b2s = w1s_ref[...], b1s_ref[...], w2s_ref[...], b2s_ref[...]
    fcs, fcbs = fcs_ref[...], fcbs_ref[...]
    pool = pool_ref[...]
    wp1, sp1 = wp1_ref[...], sp1_ref[...]
    wp2, sp2 = wp2_ref[...], sp2_ref[...]

    feat_part = jnp.zeros((1, 1), jnp.float32)
    logit_part = jnp.zeros((1, 1), jnp.float32)
    for i in range(bn):                           # static unroll over samples in the block
        x = x_ref[i]                              # (Cin, HW)
        t1, t2, tlogit = _backbone_sample(x, w1t, b1t, w2t, b2t, fct, fcbt, pool)
        s1, s2, slogit = _backbone_sample(x, w1s, b1s, w2s, b2s, fcs, fcbs, pool)
        slog_ref[i] = slogit
        tlog_ref[i] = tlogit

        # Projection 1x1 conv (bias/BN already folded into wp/sp) [+ ReLU], in VMEM.
        p1 = jnp.dot(wp1, s1, preferred_element_type=jnp.float32) + sp1    # (C1t, HW)
        p2 = jnp.dot(wp2, s2, preferred_element_type=jnp.float32) + sp2    # (C2t, HpWp)
        if relu:
            p1 = jnp.maximum(p1, 0.0)
            p2 = jnp.maximum(p2, 0.0)
        if clip is not None:
            t1 = jnp.clip(t1, -clip, clip)
            t2 = jnp.clip(t2, -clip, clip)
        feat_part = (feat_part
                     + _smooth_l1_sum(p1, t1) * inv_f1
                     + _smooth_l1_sum(p2, t2) * inv_f2)
        logit_part = logit_part + _softmax_ce_col(slogit, tlogit) * inv_n

    floss_ref[...] += feat_part
    lloss_ref[...] += logit_part


def fused_distill_forward(x_nchw, t_params, s_params, proj_params, *, clip, relu):
    """Returns (student_logit (N,nc), teacher_logit (N,nc), feature_loss, logit_loss)."""
    n, cin, h, w = x_nchw.shape
    hw, hpwp = h * w, (h // 2) * (w // 2)
    x = x_nchw.reshape(n, cin, hw).astype(jnp.float32)      # pure reshape -- no transpose/pad
    pool = _make_pool_matrix(h, w)

    w1t, b1t, w2t, b2t, fct, fcbt = t_params
    w1s, b1s, w2s, b2s, fcs, fcbs = s_params
    (wp1, sp1), (wp2, sp2) = proj_params
    c1t, c2t, nc = w1t.shape[0], w2t.shape[0], fct.shape[0]
    c1s, c2s = w1s.shape[0], w2s.shape[0]
    assert fcs.shape[0] == nc

    bn = n if n <= 8 else 8
    assert n % bn == 0
    kernel = functools.partial(
        _fused_distill_kernel, bn=bn, relu=relu, clip=clip,
        inv_f1=1.0 / (n * c1t * hw), inv_f2=1.0 / (n * c2t * hpwp), inv_n=1.0 / n)

    slog, tlog, floss, lloss = pl.pallas_call(
        kernel,
        out_shape=(jax.ShapeDtypeStruct((n, nc, 1), jnp.float32),
                   jax.ShapeDtypeStruct((n, nc, 1), jnp.float32),
                   jax.ShapeDtypeStruct((1, 1), jnp.float32),
                   jax.ShapeDtypeStruct((1, 1), jnp.float32)),
        grid_spec=pltpu.PrefetchScalarGridSpec(
            num_scalar_prefetch=0,
            grid=(n // bn,),
            in_specs=[
                pl.BlockSpec((bn, cin, hw), lambda i: (i, 0, 0)),
                # teacher backbone weights
                pl.BlockSpec((c1t, cin), lambda i: (0, 0)),
                pl.BlockSpec((c1t, 1), lambda i: (0, 0)),
                pl.BlockSpec((c2t, c1t), lambda i: (0, 0)),
                pl.BlockSpec((c2t, 1), lambda i: (0, 0)),
                pl.BlockSpec((nc, c2t), lambda i: (0, 0)),
                pl.BlockSpec((nc, 1), lambda i: (0, 0)),
                # student backbone weights
                pl.BlockSpec((c1s, cin), lambda i: (0, 0)),
                pl.BlockSpec((c1s, 1), lambda i: (0, 0)),
                pl.BlockSpec((c2s, c1s), lambda i: (0, 0)),
                pl.BlockSpec((c2s, 1), lambda i: (0, 0)),
                pl.BlockSpec((nc, c2s), lambda i: (0, 0)),
                pl.BlockSpec((nc, 1), lambda i: (0, 0)),
                # pooling matrix + folded projection weights
                pl.BlockSpec((hw, hpwp), lambda i: (0, 0)),
                pl.BlockSpec((c1t, c1s), lambda i: (0, 0)),
                pl.BlockSpec((c1t, 1), lambda i: (0, 0)),
                pl.BlockSpec((c2t, c2s), lambda i: (0, 0)),
                pl.BlockSpec((c2t, 1), lambda i: (0, 0)),
            ],
            out_specs=(pl.BlockSpec((bn, nc, 1), lambda i: (i, 0, 0)),
                       pl.BlockSpec((bn, nc, 1), lambda i: (i, 0, 0)),
                       pl.BlockSpec((1, 1), lambda i: (0, 0)),
                       pl.BlockSpec((1, 1), lambda i: (0, 0))),
        ),
        compiler_params=pltpu.CompilerParams(dimension_semantics=("arbitrary",)),
    )(x, w1t, b1t, w2t, b2t, fct, fcbt,
      w1s, b1s, w2s, b2s, fcs, fcbs,
      pool, wp1, sp1, wp2, sp2)
    return slog.reshape(n, nc), tlog.reshape(n, nc), floss[0, 0], lloss[0, 0]


# ----------------------------------------------------------------------------
# Synthetic backbone (stand-in for the external teacher/student nn.Modules)
# ----------------------------------------------------------------------------

class TinyBackbone:
    """Exposes extract_stage_features_and_logit(x_nchw) -> ([feats NCHW], logits) and
    .params (channel-major weights) so the distill net can fuse it into one kernel."""

    def __init__(self, key, in_ch, stage_widths, num_classes):
        assert len(stage_widths) == 2, "fused distill kernel implements 2 stages"
        k1, k2, k3 = jax.random.split(key, 3)
        c1, c2 = stage_widths
        self.params = (
            jax.random.normal(k1, (c1, in_ch), jnp.float32) / jnp.sqrt(in_ch),   # w1 (C1,Cin)
            jnp.zeros((c1, 1), jnp.float32),                                     # b1
            jax.random.normal(k2, (c2, c1), jnp.float32) / jnp.sqrt(c1),         # w2 (C2,C1)
            jnp.zeros((c2, 1), jnp.float32),                                     # b2
            jax.random.normal(k3, (num_classes, c2), jnp.float32) / jnp.sqrt(c2),  # fcw
            jnp.zeros((num_classes, 1), jnp.float32),                            # fcb
        )

    def extract_stage_features_and_logit(self, x_nchw, target_downsample_ratio=None):
        return backbone_forward(x_nchw, self.params)


# ----------------------------------------------------------------------------
# TeacherStudentDistillNet
# ----------------------------------------------------------------------------

class TeacherStudentDistillNet:
    def __init__(self, teacher_model, student_model, opt, argv, key,
                 target_downsample_ratio=None):
        self.opt = opt
        self.argv = argv
        self.student_model = student_model
        self.teacher_model = teacher_model
        self.target_downsample_ratio = target_downsample_ratio
        assert hasattr(teacher_model, 'extract_stage_features_and_logit')
        assert hasattr(student_model, 'extract_stage_features_and_logit')
        # Fused training path consumes the backbone weights directly.
        assert hasattr(teacher_model, 'params') and hasattr(student_model, 'params')

        kt, ks, kp = jax.random.split(key, 3)
        test_t = jax.random.normal(
            kt, (1, 3, opt.teacher_input_image_size, opt.teacher_input_image_size), jnp.float32)
        t_feats, _ = teacher_model.extract_stage_features_and_logit(
            test_t, target_downsample_ratio)
        test_s = jax.random.normal(
            ks, (1, 3, opt.input_image_size, opt.input_image_size), jnp.float32)
        s_feats, _ = student_model.extract_stage_features_and_logit(
            test_s, target_downsample_ratio)
        assert len(t_feats) == len(s_feats) == 2

        # proj_conv_list: Conv2d(Cs, Ct, k=1) [+ BatchNorm2d(Ct, eps=1e-3)] [+ ReLU]
        # with network_weight_zero_init (randn/sqrt(out_ch)*1e-4, bias 0, BN gamma=1 beta=0).
        # Conv bias + BN are folded into channel-major (Ct, Cs) weights on the host.
        self.proj_params = []
        pks = jax.random.split(kp, len(t_feats))
        for k_i, tf_, sf_ in zip(pks, t_feats, s_feats):
            ct, cs = tf_.shape[1], sf_.shape[1]            # NCHW features -> channel at dim 1
            w_pt = jax.random.normal(k_i, (ct, cs), jnp.float32) / jnp.sqrt(ct) * 1e-4
            b = jnp.zeros((ct,), jnp.float32)
            if opt.ts_proj_no_bn:
                scale = jnp.ones((ct,), jnp.float32)
                shift = jnp.zeros((ct,), jnp.float32)
            else:
                # TODO(synk): BN folded in eval mode (running_mean=0, running_var=1, eps=1e-3);
                # PyTorch training-mode batch statistics are not implemented.
                eps = 1e-3
                gamma = jnp.ones((ct,), jnp.float32)
                beta = jnp.zeros((ct,), jnp.float32)
                run_mean = jnp.zeros((ct,), jnp.float32)
                run_var = jnp.ones((ct,), jnp.float32)
                scale = gamma / jnp.sqrt(run_var + eps)
                shift = beta - run_mean * scale
            w_fold = w_pt * scale[:, None]                 # (Ct, Cs)
            shift_fold = (b * scale + shift).reshape(ct, 1)  # (Ct, 1)
            self.proj_params.append((w_fold, shift_fold))

        self.teacher_stage_features_list = None
        self.teacher_logit = None
        self.student_stage_features_list = None
        self.student_logit = None
        self._feature_loss = None
        self._logit_loss = None
        self.training = False

    def train(self, mode=True):
        self.training = True

    def eval(self):
        self.training = False

    def forward(self, x):
        # TODO(synk): F.interpolate(bilinear) resize branch not implemented; input size must
        # match both teacher and student expected sizes (enforced by asserts).
        if self.training:
            assert x.shape[2] == self.opt.teacher_input_image_size
            assert x.shape[2] == self.opt.input_image_size
            # TODO(synk): teacher path is not wrapped for autodiff (forward-only kernel);
            # a frozen-teacher custom VJP would be needed for end-to-end jax.grad training.
            (self.student_logit, self.teacher_logit,
             self._feature_loss, self._logit_loss) = fused_distill_forward(
                x, self.teacher_model.params, self.student_model.params, self.proj_params,
                clip=self.opt.ts_clip, relu=not self.opt.ts_proj_no_relu)
            # TODO(synk): stage feature maps are not materialized in training mode -- they are
            # fused into the loss kernel so f1/f2 never hit HBM.
            self.teacher_stage_features_list = None
            self.student_stage_features_list = None
            return self.student_logit
        assert x.shape[2] == self.opt.input_image_size
        self.student_stage_features_list, self.student_logit = \
            self.student_model.extract_stage_features_and_logit(
                x, target_downsample_ratio=self.target_downsample_ratio)
        return self.student_logit

    def compute_ts_distill_loss(self):
        assert self._feature_loss is not None, "call forward() in training mode first"
        return self._feature_loss, self._logit_loss


# ----------------------------------------------------------------------------
# main
# ----------------------------------------------------------------------------

if __name__ == "__main__":
    opt = SimpleNamespace(
        input_image_size=16,
        teacher_input_image_size=16,
        ts_proj_no_bn=False,
        ts_proj_no_relu=False,
        ts_clip=None,
    )
    key = jax.random.PRNGKey(0)
    k_t, k_s, k_net, k_x = jax.random.split(key, 4)

    teacher = TinyBackbone(k_t, in_ch=3, stage_widths=[16, 32], num_classes=10)
    student = TinyBackbone(k_s, in_ch=3, stage_widths=[8, 16], num_classes=10)

    net = TeacherStudentDistillNet(teacher, student, opt, argv=[], key=k_net)
    net.train()

    x = jax.random.normal(k_x, (2, 3, 16, 16), jnp.float32)   # NCHW, like PyTorch

    student_logit = net.forward(x)
    feature_loss, logit_loss = net.compute_ts_distill_loss()
    jax.block_until_ready((student_logit, feature_loss, logit_loss))

    assert student_logit.shape == (2, 10)
    assert feature_loss.shape == () and logit_loss.shape == ()
    assert bool(jnp.isfinite(feature_loss)) and bool(jnp.isfinite(logit_loss))
    assert bool(jnp.all(jnp.isfinite(student_logit)))
    print("KERNEL_OK")
</pallas_src>

<mosaic_0001>
module attributes {stable_mosaic.version = 11 : i64} {
  func.func @_backbone_kernel(%arg0: i32, %arg1: memref<1x3x256xf32, #tpu.memory_space<vmem>>, %arg2: memref<16x3xf32, #tpu.memory_space<vmem>>, %arg3: memref<16x1xf32, #tpu.memory_space<vmem>>, %arg4: memref<32x16xf32, #tpu.memory_space<vmem>>, %arg5: memref<32x1xf32, #tpu.memory_space<vmem>>, %arg6: memref<10x32xf32, #tpu.memory_space<vmem>>, %arg7: memref<10x1xf32, #tpu.memory_space<vmem>>, %arg8: memref<256x64xf32, #tpu.memory_space<vmem>>, %arg9: memref<1x16x256xf32, #tpu.memory_space<vmem>>, %arg10: memref<1x32x64xf32, #tpu.memory_space<vmem>>, %arg11: memref<1x10x1xf32, #tpu.memory_space<vmem>>) attributes {dimension_semantics = [#tpu.dimension_semantics<parallel>], iteration_bounds = array<i64: 1>, scalar_prefetch = 0 : i64, scratch_operands = 0 : i64, tpu.core_type = #tpu.core_type<tc>, window_params = [{transform_indices = @transform_0, window_bounds = array<i64: 1, 3, 256>}, {pipeline_mode = #tpu.pipeline_mode<synchronous>, transform_indices = @transform_1, window_bounds = array<i64: 16, 3>}, {pipeline_mode = #tpu.pipeline_mode<synchronous>, transform_indices = @transform_2, window_bounds = array<i64: 16, 1>}, {pipeline_mode = #tpu.pipeline_mode<synchronous>, transform_indices = @transform_3, window_bounds = array<i64: 32, 16>}, {pipeline_mode = #tpu.pipeline_mode<synchronous>, transform_indices = @transform_4, window_bounds = array<i64: 32, 1>}, {pipeline_mode = #tpu.pipeline_mode<synchronous>, transform_indices = @transform_5, window_bounds = array<i64: 10, 32>}, {pipeline_mode = #tpu.pipeline_mode<synchronous>, transform_indices = @transform_6, window_bounds = array<i64: 10, 1>}, {pipeline_mode = #tpu.pipeline_mode<synchronous>, transform_indices = @transform_7, window_bounds = array<i64: 256, 64>}, {transform_indices = @transform_8, window_bounds = array<i64: 1, 16, 256>}, {transform_indices = @transform_9, window_bounds = array<i64: 1, 32, 64>}, {transform_indices = @transform_10, window_bounds = array<i64: 1, 10, 1>}]} {
    %c0 = arith.constant 0 : index
    %c0_0 = arith.constant 0 : index
    %0 = vector.load %arg2[%c0, %c0_0] : memref<16x3xf32, #tpu.memory_space<vmem>>, vector<16x3xf32>
    %c0_1 = arith.constant 0 : index
    %c0_2 = arith.constant 0 : index
    %1 = vector.load %arg3[%c0_1, %c0_2] : memref<16x1xf32, #tpu.memory_space<vmem>>, vector<16x1xf32>
    %c0_3 = arith.constant 0 : index
    %c0_4 = arith.constant 0 : index
    %2 = vector.load %arg4[%c0_3, %c0_4] : memref<32x16xf32, #tpu.memory_space<vmem>>, vector<32x16xf32>
    %c0_5 = arith.constant 0 : index
    %c0_6 = arith.constant 0 : index
    %3 = vector.load %arg5[%c0_5, %c0_6] : memref<32x1xf32, #tpu.memory_space<vmem>>, vector<32x1xf32>
    %c0_7 = arith.constant 0 : index
    %c0_8 = arith.constant 0 : index
    %4 = vector.load %arg6[%c0_7, %c0_8] : memref<10x32xf32, #tpu.memory_space<vmem>>, vector<10x32xf32>
    %c0_9 = arith.constant 0 : index
    %c0_10 = arith.constant 0 : index
    %5 = vector.load %arg7[%c0_9, %c0_10] : memref<10x1xf32, #tpu.memory_space<vmem>>, vector<10x1xf32>
    %c0_11 = arith.constant 0 : index
    %c0_12 = arith.constant 0 : index
    %6 = vector.load %arg8[%c0_11, %c0_12] : memref<256x64xf32, #tpu.memory_space<vmem>>, vector<256x64xf32>
    %c0_13 = arith.constant 0 : index
    %c0_14 = arith.constant 0 : index
    %c0_15 = arith.constant 0 : index
    %7 = vector.load %arg1[%c0_13, %c0_14, %c0_15] : memref<1x3x256xf32, #tpu.memory_space<vmem>>, vector<1x3x256xf32>
    %8 = vector.shape_cast %7 : vector<1x3x256xf32> to vector<3x256xf32>
    %cst = arith.constant dense<0.000000e+00> : vector<16x256xf32>
    %9 = tpu.matmul %0, %8, %cst {dimension_numbers = #tpu.dot_dimension_numbers<[1], [0], [0], [1], [0, 0, 1, 1], [], []>} : vector<16x3xf32>, vector<3x256xf32>, vector<16x256xf32> -> vector<16x256xf32>
    %10 = vector.broadcast %1 : vector<16x1xf32> to vector<16x256xf32>
    %11 = arith.addf %9, %10 : vector<16x256xf32>
    %cst_16 = arith.constant 0.000000e+00 : f32
    %12 = vector.broadcast %cst_16 : f32 to vector<16x256xf32>
    %13 = arith.maximumf %11, %12 : vector<16x256xf32>
    %cst_17 = arith.constant dense<0.000000e+00> : vector<16x64xf32>
    %14 = tpu.matmul %13, %6, %cst_17 {dimension_numbers = #tpu.dot_dimension_numbers<[1], [0], [0], [1], [0, 0, 1, 1], [], []>} : vector<16x256xf32>, vector<256x64xf32>, vector<16x64xf32> -> vector<16x64xf32>
    %cst_18 = arith.constant dense<0.000000e+00> : vector<32x64xf32>
    %15 = tpu.matmul %2, %14, %cst_18 {dimension_numbers = #tpu.dot_dimension_numbers<[1], [0], [0], [1], [0, 0, 1, 1], [], []>} : vector<32x16xf32>, vector<16x64xf32>, vector<32x64xf32> -> vector<32x64xf32>
    %16 = vector.broadcast %3 : vector<32x1xf32> to vector<32x64xf32>
    %17 = arith.addf %15, %16 : vector<32x64xf32>
    %cst_19 = arith.constant 0.000000e+00 : f32
    %18 = vector.broadcast %cst_19 : f32 to vector<32x64xf32>
    %19 = arith.maximumf %17, %18 : vector<32x64xf32>
    %cst_20 = arith.constant dense<0.000000e+00> : vector<32xf32>
    %20 = vector.multi_reduction <add>, %19, %cst_20 [1] : vector<32x64xf32> to vector<32xf32>
    %21 = vector.shape_cast %20 : vector<32xf32> to vector<32x1xf32>
    %cst_21 = arith.constant 6.400000e+01 : f32
    %22 = vector.broadcast %cst_21 : f32 to vector<32x1xf32>
    %23 = arith.divf %21, %22 : vector<32x1xf32>
    %cst_22 = arith.constant dense<0.000000e+00> : vector<10x1xf32>
    %24 = tpu.matmul %4, %23, %cst_22 {dimension_numbers = #tpu.dot_dimension_numbers<[1], [0], [0], [1], [0, 0, 1, 1], [], []>} : vector<10x32xf32>, vector<32x1xf32>, vector<10x1xf32> -> vector<10x1xf32>
    %25 = arith.addf %24, %5 : vector<10x1xf32>
    %c0_23 = arith.constant 0 : index
    %c0_24 = arith.constant 0 : index
    %c0_25 = arith.constant 0 : index
    %26 = vector.load %arg9[%c0_23, %c0_24, %c0_25] : memref<1x16x256xf32, #tpu.memory_space<vmem>>, vector<1x16x256xf32>
    %27 = vector.shape_cast %26 : vector<1x16x256xf32> to vector<16x256xf32>
    %28 = vector.shape_cast %13 : vector<16x256xf32> to vector<1x16x256xf32>
    tpu.vector_store %arg9[%c0_23, %c0_24, %c0_25], %28 {strides = array<i32>} : memref<1x16x256xf32, #tpu.memory_space<vmem>>, vector<1x16x256xf32>,
    %c0_26 = arith.constant 0 : index
    %c0_27 = arith.constant 0 : index
    %c0_28 = arith.constant 0 : index
    %29 = vector.load %arg10[%c0_26, %c0_27, %c0_28] : memref<1x32x64xf32, #tpu.memory_space<vmem>>, vector<1x32x64xf32>
    %30 = vector.shape_cast %29 : vector<1x32x64xf32> to vector<32x64xf32>
    %31 = vector.shape_cast %19 : vector<32x64xf32> to vector<1x32x64xf32>
    tpu.vector_store %arg10[%c0_26, %c0_27, %c0_28], %31 {strides = array<i32>} : memref<1x32x64xf32, #tpu.memory_space<vmem>>, vector<1x32x64xf32>,
    %c0_29 = arith.constant 0 : index
    %c0_30 = arith.constant 0 : index
    %c0_31 = arith.constant 0 : index
    %32 = vector.load %arg11[%c0_29, %c0_30, %c0_31] : memref<1x10x1xf32, #tpu.memory_space<vmem>>, vector<1x10x1xf32>
    %33 = vector.shape_cast %32 : vector<1x10x1xf32> to vector<10x1xf32>
    %34 = vector.shape_cast %25 : vector<10x1xf32> to vector<1x10x1xf32>
    tpu.vector_store %arg11[%c0_29, %c0_30, %c0_31], %34 {strides = array<i32>} : memref<1x10x1xf32, #tpu.memory_space<vmem>>, vector<1x10x1xf32>,
    return
  }
  func.func @transform_0(%arg0: i32) -> (i32, i32, i32) {
    %c0_i32 = arith.constant 0 : i32
    %c0_i32_0 = arith.constant 0 : i32
    %c0_i32_1 = arith.constant 0 : i32
    return %arg0, %c0_i32, %c0_i32_0 : i32, i32, i32
  }
  func.func @transform_1(%arg0: i32) -> (i32, i32) {
    %c0_i32 = arith.constant 0 : i32
    %c0_i32_0 = arith.constant 0 : i32
    %c0_i32_1 = arith.constant 0 : i32
    return %c0_i32, %c0_i32_0 : i32, i32
  }
  func.func @transform_2(%arg0: i32) -> (i32, i32) {
    %c0_i32 = arith.constant 0 : i32
    %c0_i32_0 = arith.constant 0 : i32
    %c0_i32_1 = arith.constant 0 : i32
    return %c0_i32, %c0_i32_0 : i32, i32
  }
  func.func @transform_3(%arg0: i32) -> (i32, i32) {
    %c0_i32 = arith.constant 0 : i32
    %c0_i32_0 = arith.constant 0 : i32
    %c0_i32_1 = arith.constant 0 : i32
    return %c0_i32, %c0_i32_0 : i32, i32
  }
  func.func @transform_4(%arg0: i32) -> (i32, i32) {
    %c0_i32 = arith.constant 0 : i32
    %c0_i32_0 = arith.constant 0 : i32
    %c0_i32_1 = arith.constant 0 : i32
    return %c0_i32, %c0_i32_0 : i32, i32
  }
  func.func @transform_5(%arg0: i32) -> (i32, i32) {
    %c0_i32 = arith.constant 0 : i32
    %c0_i32_0 = arith.constant 0 : i32
    %c0_i32_1 = arith.constant 0 : i32
    return %c0_i32, %c0_i32_0 : i32, i32
  }
  func.func @transform_6(%arg0: i32) -> (i32, i32) {
    %c0_i32 = arith.constant 0 : i32
    %c0_i32_0 = arith.constant 0 : i32
    %c0_i32_1 = arith.constant 0 : i32
    return %c0_i32, %c0_i32_0 : i32, i32
  }
  func.func @transform_7(%arg0: i32) -> (i32, i32) {
    %c0_i32 = arith.constant 0 : i32
    %c0_i32_0 = arith.constant 0 : i32
    %c0_i32_1 = arith.constant 0 : i32
    return %c0_i32, %c0_i32_0 : i32, i32
  }
  func.func @transform_8(%arg0: i32) -> (i32, i32, i32) {
    %c0_i32 = arith.constant 0 : i32
    %c0_i32_0 = arith.constant 0 : i32
    %c0_i32_1 = arith.constant 0 : i32
    return %arg0, %c0_i32, %c0_i32_0 : i32, i32, i32
  }
  func.func @transform_9(%arg0: i32) -> (i32, i32, i32) {
    %c0_i32 = arith.constant 0 : i32
    %c0_i32_0 = arith.constant 0 : i32
    %c0_i32_1 = arith.constant 0 : i32
    return %arg0, %c0_i32, %c0_i32_0 : i32, i32, i32
  }
  func.func @transform_10(%arg0: i32) -> (i32, i32, i32) {
    %c0_i32 = arith.constant 0 : i32
    %c0_i32_0 = arith.constant 0 : i32
    %c0_i32_1 = arith.constant 0 : i32
    return %arg0, %c0_i32, %c0_i32_0 : i32, i32, i32
  }
}

</mosaic_0001>

<bundles_post_ra>
// kernel: tpu_custom_call.1
= control target key start
LH: loop header
LB: loop body
LE: loop exit
PB: predicated region body
PF: predicated region fallthrough
CT: control target
= control target key end

     0   :  { %16 = vsyncpa [#allocation3], 0  ;;  %v455_v3 = vmov 0   ;;  %vm104_vm0 = vcmask 1042432   ;;  %vm97_vm1 = vcmask 23552   ;;  %s692_s0 = inlined_call_operand.vmem [shape: f32[1,3,256], index: 0, kind: input, shape index: {}]   ;;  %s693_s1 = inlined_call_operand.vmem [shape: f32[16,3], index: 1, kind: input, shape index: {}]   ;;  %s694_s2 = inlined_call_operand.vmem [shape: f32[16,1], index: 2, kind: input, shape index: {}]   ;;  %s695_s3 = inlined_call_operand.vmem [shape: f32[32,16], index: 3, kind: input, shape index: {}]   ;;  %s696_s4 = inlined_call_operand.vmem [shape: f32[32,1], index: 4, kind: input, shape index: {}]   ;;  %s697_s5 = inlined_call_operand.vmem [shape: f32[10,32], index: 5, kind: input, shape index: {}]   ;;  %s698_s6 = inlined_call_operand.vmem [shape: f32[10,1], index: 6, kind: input, shape index: {}]   ;;  %s699_s7 = inlined_call_operand.vmem [shape: f32[256,64], index: 7, kind: input, shape index: {}]   ;;  %s700_s8 = inlined_call_operand.hbm [shape: f32[1,16,256], index: 8, kind: output, shape index: {0}]   ;;  %s701_s9 = inlined_call_operand.hbm [shape: f32[1,32,64], index: 9, kind: output, shape index: {1}]   ;;  %s702_s10 = inlined_call_operand.vmem [shape: f32[1,10,1], index: 10, kind: output, shape index: {2}]  }
   0x1   :  { %v82_v0 = vld [vmem:[%s692_s0] sm:$0x77]  ;;  %v65_v2 = vld [vmem:[%s699_s7 + $0x78] sm:$0xff]  ;;  %398 = vset.pattern.permute.xlu0 %v455_v3  ;;  %v64_v4 = vld [vmem:[%s699_s7 + $0x70] sm:$0xff]  ;;  %399 = vset.pattern.permute.xlu1 %v455_v3 }
   0x2   :  { %94 = vst [vmem:[#allocation1] ss:$2 sm:$0xff] %v82_v0  ;;  %v36_v1 = vld [vmem:[%s694_s2] sm:$0xff]  ;;  %159 = vmatpush.msra.mxu2 %v65_v2  ;;  %v63_v5 = vld [vmem:[%s699_s7 + $0x68] sm:$0xff]  ;;  %v81_v6 = vld [vmem:[%s699_s7 + $0xf8] sm:$0xff]  ;;  %400 = vset.pattern.permute.xlu2 %v455_v3 }
   0x3   :  { %85 = vperm.xlu0 %398, %v36_v1   ;;  %182 = vmatpush.msra.mxu3 %v81_v6  ;;  %v80_v7 = vld [vmem:[%s699_s7 + $0xf0] sm:$0xff]  ;;  %v62_v8 = vld [vmem:[%s699_s7 + $0x60] sm:$0xff]  ;;  %v79_v9 = vld [vmem:[%s699_s7 + $0xe8] sm:$0xff] }
   0x4   :  { %160 = vmatpush.msra.mxu2 %v64_v4  ;;  %v34_v10 = vld [vmem:[%s693_s1] sm:$0xff]  ;;  %v35_v11 = vld [vmem:[%s693_s1 + $0x8] sm:$0xff] }
   0x5   :  { %183 = vmatpush.msra.mxu3 %v80_v7  ;;  %v37_v12 = vld [vmem:[%s694_s2 + $0x8] sm:$0xff] }
   0x6   :  { %161 = vmatpush.msra.mxu2 %v63_v5 }
   0x7   :  { %17 = vsyncpa [#allocation5], 0  ;;  %184 = vmatpush.msra.mxu3 %v79_v9  ;;  %v61_v15 = vld [vmem:[%s699_s7 + $0x58] sm:$0xff]  ;;  %v78_v16 = vld [vmem:[%s699_s7 + $0xe0] sm:$0xff]  ;;  %vm225_vm2 = vcmask 130048   ;;  %vm271_vm3 = vcmask 523264  }
   0x8   :  { %162 = vmatpush.msra.mxu2 %v62_v8  ;;  %v60_v17 = vld [vmem:[%s699_s7 + $0x50] sm:$0xff]  ;;  %v77_v18 = vld [vmem:[%s699_s7 + $0xd8] sm:$0xff]  ;;  %v59_v19 = vld [vmem:[%s699_s7 + $0x48] sm:$0xff]  ;;  %vm295_vm5 = vcmask 261120   ;;  %s457_s14 = smov [#allocation2]   ;;  %s343_s18 = sshll.u32 %s700_s8, 4  ;;  %s344_s18 = int_to_ptr.hbm [resolvable:$true] %s343_s18 }
   0x9   :  { %v95_v13 = vld.sshfl [vmem:[#allocation1] sm:$0xff pattern:$0x75316420]  ;;  %v96_v14 = vld.sshfl [vmem:[#allocation1 + $0x8] sm:$0xff pattern:$0x75316420]  ;;  %185 = vmatpush.msra.mxu3 %v78_v16 }
   0xa   :  { %377 = vmatpush.msk.msra.mxu0 %vm104_vm0, %v95_v13  ;;  %389 = vmatpush.msk.msra.mxu1 %vm104_vm0, %v95_v13  ;;  %v76_v20 = vld [vmem:[%s699_s7 + $0xd0] sm:$0xff]  ;;  %v58_v21 = vld [vmem:[%s699_s7 + $0x40] sm:$0xff]  ;;  %v57_v22 = vld [vmem:[%s699_s7 + $0x38] sm:$0xff]  ;;  %s341_s15 = sshll.u32 %s457_s14, 4  ;;  %s458_s19 = smov 256   ;;  %vm333_vm6 = vcmask 7168   ;;  %s342_s15 = int_to_ptr.vmem [resolvable:$true] %s341_s15 }
   0xb   :  { %378 = vmatmul.msk.f32.vlgmr.msra.gmra.mxu0 %vm97_vm1, %v34_v10  ;;  %379 = vmatmul.msk.f32.vlgmr.msra.gmra.mxu1 %vm97_vm1, %v35_v11  ;;  %v56_v23 = vld [vmem:[%s699_s7 + $0x30] sm:$0xff]  ;;  %v55_v24 = vld [vmem:[%s699_s7 + $0x28] sm:$0xff]  ;;  %v54_v26 = vld [vmem:[%s699_s7 + $0x20] sm:$0xff]  ;;  %s460_s1 = smov [#allocation4]   ;;  %s356_s22 = sshll.u32 %s701_s9, 4  ;;  %vm335_vm7 = vcmask 1024   ;;  %s357_s22 = int_to_ptr.hbm [resolvable:$true] %s356_s22 }
   0xc   :  { %380 = vmatpush.msk.msrb.mxu1 %vm104_vm0, %v96_v14  ;;  %90 = vperm.xlu0 %398, %v37_v12   ;;  %v75_v25 = vld [vmem:[%s699_s7 + $0xc8] sm:$0xff]  ;;  %v74_v27 = vld [vmem:[%s699_s7 + $0xc0] sm:$0xff]  ;;  %v53_v28 = vld [vmem:[%s699_s7 + $0x18] sm:$0xff]  ;;  %s354_s2 = sshll.u32 %s460_s1, 4  ;;  %s462_s0 = smov 8   ;;  %s355_s2 = int_to_ptr.vmem [resolvable:$true] %s354_s2 }
   0xd   :  { %163 = vmatpush.msra.mxu2 %v61_v15  ;;  %186 = vmatpush.msra.mxu3 %v77_v18  ;;  %v73_v29 = vld [vmem:[%s699_s7 + $0xb8] sm:$0xff]  ;;  %v52_v30 = vld [vmem:[%s699_s7 + $0x10] sm:$0xff]  ;;  %v51_v32 = vld [vmem:[%s699_s7 + $0x8] sm:$0xff] }
   0xe   :  { %v72_v31 = vld [vmem:[%s699_s7 + $0xb0] sm:$0xff]  ;;  %v71_v33 = vld [vmem:[%s699_s7 + $0xa8] sm:$0xff]  ;;  %v50_v34 = vld [vmem:[%s699_s7] sm:$0xff] }
   0xf   :  { %164 = vmatpush.msra.mxu2 %v60_v17  ;;  %187 = vmatpush.msra.mxu3 %v76_v20  ;;  %v70_v35 = vld [vmem:[%s699_s7 + $0xa0] sm:$0xff]  ;;  %v69_v36 = vld [vmem:[%s699_s7 + $0x98] sm:$0xff]  ;;  %v68_v37 = vld [vmem:[%s699_s7 + $0x90] sm:$0xff] }
  0x10   :  { %v67_v38 = vld [vmem:[%s699_s7 + $0x88] sm:$0xff]  ;;  %v66_v39 = vld [vmem:[%s699_s7 + $0x80] sm:$0xff]  ;;  %v45_v55 = vld [vmem:[%s696_s4 + $0x18] sm:$0xff]  ;;  %s459_s7 = smov 16  }
  0x11   :  { %165 = vmatpush.msra.mxu2 %v59_v19  ;;  %188 = vmatpush.msra.mxu3 %v75_v25  ;;  %v44_v57 = vld [vmem:[%s696_s4 + $0x10] sm:$0xff]  ;;  %v43_v58 = vld [vmem:[%s696_s4 + $0x8] sm:$0xff]  ;;  %v38_v63 = vld [vmem:[%s695_s3] sm:$0xff] }
  0x12   :  { %222 = vperm.xlu1 %399, %v45_v55   ;;  %212 = vperm.xlu2 %400, %v43_v58   ;;  %v42_v0 = vld [vmem:[%s696_s4] sm:$0xff]  ;;  %v39_v1 = vld [vmem:[%s695_s3 + $0x8] sm:$0xff]  ;;  %v40_v2 = vld [vmem:[%s695_s3 + $0x10] sm:$0xff] }
  0x13   :  { %381 = vmatmul.msk.f32.vlgmr.msrb.gmra.mxu1 %vm97_vm1, %v34_v10  ;;  %166 = vmatpush.msra.mxu2 %v58_v21  ;;  %v41_v3 = vld [vmem:[%s695_s3 + $0x18] sm:$0xff] }
  0x14   :  { %189 = vmatpush.msra.mxu3 %v74_v27 }
  0x15   :  { %167 = vmatpush.msra.mxu2 %v57_v22 }
  0x16   :  { %190 = vmatpush.msra.mxu3 %v73_v29 }
  0x17   :  { %168 = vmatpush.msra.mxu2 %v56_v23 }
  0x18   :  { %191 = vmatpush.msra.mxu3 %v72_v31 }
  0x19   :  { %169 = vmatpush.msra.mxu2 %v55_v24  ;;  %v456_v24 = vmov 64.0  }
  0x1a   :  { %192 = vmatpush.msra.mxu3 %v71_v33  ;;  %217 = vperm.xlu1 %399, %v44_v57   ;;  %401 = vrcp.f32 %v456_v24 }
  0x1b   :  { %382 = vmatmul.msk.f32.gmra.mxu1 %vm97_vm1, %v35_v11  ;;  %170 = vmatpush.msra.mxu2 %v54_v26 }
  0x1c   :  { %193 = vmatpush.msra.mxu3 %v70_v35  ;;  %207 = vperm.xlu2 %400, %v42_v0  }
  0x1d   :  { %171 = vmatpush.msra.mxu2 %v53_v28 }
  0x1e   :  { %194 = vmatpush.msra.mxu3 %v69_v36 }
  0x1f   :  { %172 = vmatpush.msra.mxu2 %v52_v30 }
  0x20   :  { %195 = vmatpush.msra.mxu3 %v68_v37  ;;  %v402_v25 = vpop.eup %401 }
  0x21   :  { %173 = vmatpush.msra.mxu2 %v51_v32  ;;  %v285_v26 = vmul.f32 64.0, %v402_v25  ;;  %vm289_vm4 = vweird.f32 %v402_v25 }
  0x22   :  { %196 = vmatpush.msra.mxu3 %v67_v38 }
  0x23   :  { %174 = vmatpush.msra.mxu2 %v50_v34  ;;  %v286_v27 = vsub.f32 1.0, %v285_v26 }
  0x24   :  { %197 = vmatpush.msra.mxu3 %v66_v39  ;;  %v46_v39 = vld [vmem:[%s697_s5] sm:$0xff] }
  0x25   :  { %v287_v28 = vmul.f32 %v402_v25, %v286_v27 }
  0x27   :  { %v288_v30 = vadd.f32 %v402_v25, %v287_v28 }
  0x29   :  { %v290_v31 = vsel %vm289_vm4, %v402_v25, %v288_v30 }
  0x6c   :  { %v213_v4 = vpop.permute.xlu2 %212 }
  0x75   :  { %v86_v40 = vpop.permute.xlu0 %85 }
  0x76   :  { %v208_v5 = vpop.permute.xlu2 %207 }
  0x7e   :  { %v91_v41 = vpop.permute.xlu0 %90 }
  0x84   :  { %v223_v9 = vpop.permute.xlu1 %222 }
  0x88   :  { %v126_v42 = vpop.f32.mrf.mxu0  ;;  %v129_v43 = vpop.f32.mrf.mxu1 }
  0x89   :  { %v127_v44 = vadd.f32 %v126_v42, %v86_v40  ;;  %v130_v45 = vadd.f32 %v129_v43, %v91_v41 }
  0x8b   :  { %v155_v46 = vmax.f32 %v127_v44, 0.0  ;;  %v157_v47 = vmax.f32 %v130_v45, 0.0  ;;  %v49_v44 = vld [vmem:[%s698_s6 + $0x8] sm:$0x3] }
  0x8c   :  { %v218_v14 = vpop.permute.xlu1 %217 }
  0x8d   :  { %325 = vst [vmem:[#allocation2] sm:$0xff] %v155_v46  ;;  %175 = vmatmul.f32.vlgmr.msra.gmra.mxu2 %v155_v46 }
  0x8e   :  { %327 = vst [vmem:[#allocation2 + $0x10] sm:$0xff] %v157_v47 }
  0x90   :  { %v149_v48 = vpop.f32.mrf.mxu1 }
  0x91   :  { %v150_v49 = vadd.f32 %v149_v48, %v86_v40  ;;  %v47_v40 = vld [vmem:[%s697_s5 + $0x8] sm:$0x3]  ;;  %s461_s5 = smov 128  }
  0x93   :  { %v156_v50 = vmax.f32 %v150_v49, 0.0 }
  0x95   :  { %326 = vst [vmem:[#allocation2 + $0x8] sm:$0xff] %v156_v50  ;;  %178 = vmatmul.f32.gmra.mxu2 %v157_v47  ;;  %198 = vmatmul.f32.vlgmr.msra.gmra.mxu3 %v156_v50 }
  0x98   :  { %v152_v51 = vpop.f32.mrf.mxu1 }
  0x99   :  { %v153_v52 = vadd.f32 %v152_v51, %v91_v41  ;;  %v48_v41 = vld [vmem:[%s698_s6] sm:$0xff] }
  0x9b   :  { %v158_v53 = vmax.f32 %v153_v52, 0.0 }
  0x9d   :  { %328 = vst [vmem:[#allocation2 + $0x18] sm:$0xff] %v158_v53  ;;  %201 = vmatmul.f32.gmra.mxu3 %v158_v53 }
  0x9e   :  { %349 = dma.vmem_to_hbm [thread:$0]  %s342_s15, 512, %s344_s18, [#allocation3], %s458_s19, %s458_s19, %s459_s7  }
 0x110   :  { %v176_v54 = vpop.f32.mrf.mxu2 }
 0x118   :  { %v199_v56 = vpop.f32.mrf.mxu3  ;;  %v179_v59 = vpop.f32.mrf.mxu2 }
 0x119   :  { %v200_v62 = vadd.f32 %v199_v56, %v176_v54 }
 0x120   :  { %v202_v60 = vpop.f32.mrf.mxu3 }
 0x121   :  { %v203_v61 = vadd.f32 %v202_v60, %v179_v59 }
 0x123   :  { %252 = vmatpush.msrb.mxu0 %v203_v61 }
 0x125   :  { %253 = vmatpush.msrb.mxu0 %v200_v62 }
 0x126   :  { %383 = vmatmul.msk.f32.vlgmr.msrb.gmra.mxu0 %vm225_vm2, %v38_v63 }
 0x12e   :  { %384 = vmatmul.msk.f32.gmra.mxu0 %vm225_vm2, %v39_v1 }
 0x136   :  { %385 = vmatmul.msk.f32.gmra.mxu0 %vm225_vm2, %v40_v2 }
 0x13e   :  { %386 = vmatmul.msk.f32.gmra.mxu0 %vm225_vm2, %v41_v3 }
 0x1a3   :  { %v255_v6 = vpop.f32.mrf.mxu0 }
 0x1a4   :  { %v256_v7 = vadd.f32 %v255_v6, %v208_v5 }
 0x1a6   :  { %v267_v8 = vmax.f32 %v256_v7, 0.0 }
 0x1a8   :  { %329 = vst.msk [vmem:[#allocation4] sm:$0xff] %vm271_vm3, %v267_v8  ;;  %v272_v19 = vsel %vm271_vm3, %v267_v8, 0.0 }
 0x1ab   :  { %v258_v10 = vpop.f32.mrf.mxu0 }
 0x1ac   :  { %v259_v11 = vadd.f32 %v258_v10, %v213_v4 }
 0x1ae   :  { %v268_v12 = vmax.f32 %v259_v11, 0.0 }
 0x1b0   :  { %330 = vst.msk [vmem:[#allocation4 + $0x8] sm:$0xff] %vm271_vm3, %v268_v12  ;;  %v275_v13 = vsel %vm271_vm3, %v268_v12, 0.0 }
 0x1b1   :  { %276 = vadd.xlane.f32.xlu2 %v275_v13 }
 0x1b3   :  { %v261_v15 = vpop.f32.mrf.mxu0 }
 0x1b4   :  { %v262_v16 = vadd.f32 %v261_v15, %v218_v14 }
 0x1b6   :  { %v269_v17 = vmax.f32 %v262_v16, 0.0 }
 0x1b8   :  { %331 = vst.msk [vmem:[#allocation4 + $0x10] sm:$0xff] %vm271_vm3, %v269_v17  ;;  %v278_v18 = vsel %vm271_vm3, %v269_v17, 0.0 }
 0x1b9   :  { %279 = vadd.xlane.f32.xlu1 %v278_v18  ;;  %273 = vadd.xlane.f32.xlu2 %v272_v19 }
 0x1bb   :  { %v264_v20 = vpop.f32.mrf.mxu0 }
 0x1bc   :  { %v265_v21 = vadd.f32 %v264_v20, %v223_v9 }
 0x1be   :  { %v270_v22 = vmax.f32 %v265_v21, 0.0 }
 0x1c0   :  { %332 = vst.msk [vmem:[#allocation4 + $0x18] sm:$0xff] %vm271_vm3, %v270_v22  ;;  %v281_v23 = vsel %vm271_vm3, %v270_v22, 0.0 }
 0x1c1   :  { %282 = vadd.xlane.f32.xlu0 %v281_v23  ;;  %362 = dma.vmem_to_hbm [thread:$0]  %s355_s2, 512, %s357_s22, [#allocation5], %s461_s5, %s461_s5, %s462_s0  }
 0x224   :  { %v277_v29 = vpop.xlane.xlu2 %276 }
 0x225   :  { %v292_v37 = vmul.f32 %v290_v31, %v277_v29 }
 0x22c   :  { %v280_v32 = vpop.xlane.xlu1 %279  ;;  %v274_v36 = vpop.xlane.xlu2 %273 }
 0x22d   :  { %v293_v35 = vmul.f32 %v290_v31, %v280_v32  ;;  %v291_v38 = vmul.f32 %v290_v31, %v274_v36 }
 0x234   :  { %v283_v33 = vpop.xlane.xlu0 %282 }
 0x235   :  { %v294_v34 = vmul.f32 %v290_v31, %v283_v33 }
 0x237   :  { %314 = vmatpush.msra.mxu1 %v294_v34 }
 0x239   :  { %315 = vmatpush.msra.mxu1 %v293_v35 }
 0x23b   :  { %316 = vmatpush.msra.mxu1 %v292_v37 }
 0x23d   :  { %317 = vmatpush.msra.mxu1 %v291_v38 }
 0x23e   :  { %387 = vmatmul.msk.f32.vlgmr.msra.gmra.mxu1 %vm295_vm5, %v46_v39 }
 0x246   :  { %388 = vmatmul.msk.f32.gmra.mxu1 %vm295_vm5, %v47_v40 }
 0x2bb   :  { %v319_v42 = vpop.f32.mrf.mxu1 }
 0x2bc   :  { %v320_v43 = vadd.f32 %v319_v42, %v48_v41 }
 0x2be   :  { %334 = vst.msk [vmem:[%s702_s10] sm:$0xff] %vm333_vm6, %v320_v43 }
 0x2c3   :  { %v322_v45 = vpop.f32.mrf.mxu1 }
 0x2c4   :  { %v323_v46 = vadd.f32 %v322_v45, %v49_v44 }
 0x2c6   :  { %336 = vst.msk [vmem:[%s702_s10 + $0x8] sm:$0x3] %vm335_vm7, %v323_v46 }
 0x2c7   :  { %451 = dma.done.wait [#allocation3], 512  }
 0x2c8   :  { %452 = vsyncadd [#allocation3], 4294966784 }
 0x2c9   :  { %453 = dma.done.wait [#allocation5], 512  }
 0x2ca   :  { %454 = vsyncadd [#allocation5], 4294966784 }
 0x2cb   :  { %375 = vsyncpa [#allocation3], 1 }
 0x2cc   :  { %376 = vsyncpa [#allocation5], 1 }

</bundles_post_ra>
